<compile_context>
chip_gen: v7x
topology: tpu7x:2x2x1
jax: 0.10.0
libtpu: 0.0.40
codegen_flags: <defaults>
</compile_context>

<pallas_src>
import functools

import jax
import jax.numpy as jnp
from jax.experimental import pallas as pl
from jax.experimental.pallas import tpu as pltpu


def _round_up(x, m):
    return (x + m - 1) // m * m


def _tpu_generation():
    """Best-effort TPU generation detection ('v5e' | 'v6e' | 'v7x' | None)."""
    try:
        kind = jax.devices()[0].device_kind.lower()
    except Exception:  # pragma: no cover - defensive
        return None
    if "v7" in kind:
        return "v7x"
    if "v6" in kind:
        return "v6e"
    if "v5" in kind:
        return "v5e"
    return None


def ffn_kernel(x_ref, w1_ref, b1_ref, w2_ref, b2_ref, o_ref, acc_ref, *, tile_h):
    """One (M-tile, hidden-tile) step of relu(x@W1 + b1) @ W2 + b2."""
    h_idx = pl.program_id(1)

    @pl.when(h_idx == 0)
    def _():
        acc_ref[...] = jnp.zeros_like(acc_ref)

    # First matmul on this hidden slice: (tile_m, D_pad) @ (D_pad, tile_h),
    # f32 accumulation on the MXU.
    h = jnp.dot(x_ref[...], w1_ref[...], preferred_element_type=jnp.float32)

    # b1 is resident in VMEM for the whole kernel; slice the active hidden
    # window (start is a multiple of 128 -> aligned lane slice).
    h_start = pl.multiple_of(h_idx * tile_h, 128)
    b1 = b1_ref[:, pl.ds(h_start, tile_h)]
    h = jnp.maximum(h + b1, 0.0)
    # Dropout: identity (eval / inference mode).

    # Second matmul, accumulated across hidden tiles in f32.
    acc_ref[...] += jnp.dot(h.astype(w2_ref.dtype), w2_ref[...],
                            preferred_element_type=jnp.float32)

    @pl.when(h_idx == pl.num_programs(1) - 1)
    def _():
        o_ref[...] = (acc_ref[...] + b2_ref[...]).astype(o_ref.dtype)


def feed_forward(x, w1, b1, w2, b2, *, tile_m=None, tile_h=None,
                 compute_dtype=jnp.bfloat16):
    """x: (B, S, d_model); w1: (d_model, hidden); w2: (hidden, d_model)."""
    B, S, d_model = x.shape
    hidden = w1.shape[1]
    M = B * S
    out_dtype = x.dtype

    # --- generation-specific configuration ---------------------------------
    gen = _tpu_generation()
    if gen == "v6e":
        # 918 TF/s vs ~1.35 TB/s -> need ~680 flops/byte -> tile_m ~1024.
        default_tile_m, mxu_m, vmem_cap, out_buffers = 1024, 256, 100 << 20, 2
    elif gen == "v7x":
        # ~996 TF/s per TC vs ~3.2 TB/s -> ~320 flops/byte; 64 MiB VMEM per TC.
        default_tile_m, mxu_m, vmem_cap, out_buffers = 512, 256, 52 << 20, 1
    elif gen == "v5e":
        # 197 TF/s vs ~0.82 TB/s -> ~240 flops/byte; MXU is 128x128.
        default_tile_m, mxu_m, vmem_cap, out_buffers = 512, 128, 100 << 20, 2
    else:
        default_tile_m, mxu_m, vmem_cap, out_buffers = 512, 128, 64 << 20, 2

    if tile_m is None:
        tile_m = default_tile_m
    if tile_h is None:
        tile_h = 512

    # --- hardware-friendly tile sizes --------------------------------------
    # tile_m: clamp to padded token count, round to the MXU dimension when the
    # problem is large enough; 16-row floor for bf16 sublane packing.
    m_ceiling = _round_up(M, 16)
    tile_m = max(16, min(tile_m, m_ceiling))
    tile_m = _round_up(tile_m, mxu_m if tile_m >= mxu_m else 16)
    # v7x megacore: prefer >=2 M tiles so the "parallel" axis spans both cores.
    if gen == "v7x" and tile_m >= m_ceiling and m_ceiling >= 2 * mxu_m:
        tile_m = _round_up((m_ceiling + 1) // 2, mxu_m)

    h_ceiling = _round_up(hidden, 128)
    tile_h = max(128, min(tile_h, h_ceiling))
    tile_h = _round_up(tile_h, 128)

    M_pad = _round_up(M, tile_m)
    D_pad = _round_up(d_model, 128)
    H_pad = _round_up(hidden, tile_h)
    grid = (M_pad // tile_m, H_pad // tile_h)

    # --- pad + cast operands (zero padding is exact: padded rows/cols only
    #     produce contributions that are sliced off or multiplied by zero) ---
    xf = x.reshape(M, d_model).astype(compute_dtype)
    xf = jnp.pad(xf, ((0, M_pad - M), (0, D_pad - d_model)))
    w1p = jnp.pad(w1.astype(compute_dtype),
                  ((0, D_pad - d_model), (0, H_pad - hidden)))
    w2p = jnp.pad(w2.astype(compute_dtype),
                  ((0, H_pad - hidden), (0, D_pad - d_model)))
    b1p = jnp.pad(b1.astype(jnp.float32), (0, H_pad - hidden)).reshape(1, H_pad)
    b2p = jnp.pad(b2.astype(jnp.float32), (0, D_pad - d_model)).reshape(1, D_pad)

    # --- honest VMEM budget: actual buffer census ---------------------------
    csz = jnp.dtype(compute_dtype).itemsize
    osz = jnp.dtype(out_dtype).itemsize
    est = (2 * tile_m * D_pad * csz            # x tile (double-buffered)
           + 2 * D_pad * tile_h * csz          # W1 slice (double-buffered)
           + 2 * H_pad * 4                     # b1 resident (1, H_pad) f32
           + 2 * tile_h * D_pad * csz          # W2 slice (double-buffered)
           + 2 * D_pad * 4                     # b2
           + out_buffers * tile_m * D_pad * osz  # output tile(s)
           + tile_m * D_pad * 4                # f32 accumulator scratch
           + tile_m * tile_h * (4 + csz))      # relu intermediate + bf16 copy
    vmem_limit = int(min(max(est + est // 4, 32 << 20), vmem_cap))

    # --- scheduler hint: weights are re-streamed once per M tile ------------
    flops = 4 * M_pad * D_pad * H_pad  # two matmuls, 2*M*N*K each
    bytes_accessed = int(M_pad * D_pad * (csz + osz)
                         + grid[0] * 2 * D_pad * H_pad * csz
                         + H_pad * 4 + D_pad * 4)

    out_index_map = lambda i, h: (i, 0)
    if out_buffers == 1:
        # v7x: output is written once per M tile; the second buffer is wasted
        # VMEM on the 64 MiB chip.
        out_spec = pl.BlockSpec((tile_m, D_pad), out_index_map,
                                pipeline_mode=pl.Buffered(1))
    else:
        out_spec = pl.BlockSpec((tile_m, D_pad), out_index_map)

    out = pl.pallas_call(
        functools.partial(ffn_kernel, tile_h=tile_h),
        out_shape=jax.ShapeDtypeStruct((M_pad, D_pad), out_dtype),
        grid_spec=pltpu.PrefetchScalarGridSpec(
            num_scalar_prefetch=0,
            grid=grid,
            in_specs=[
                pl.BlockSpec((tile_m, D_pad), lambda i, h: (i, 0)),   # x tile
                pl.BlockSpec((D_pad, tile_h), lambda i, h: (0, h)),   # W1 slice
                pl.BlockSpec((1, H_pad), lambda i, h: (0, 0)),        # b1 (resident)
                pl.BlockSpec((tile_h, D_pad), lambda i, h: (h, 0)),   # W2 slice
                pl.BlockSpec((1, D_pad), lambda i, h: (0, 0)),        # b2
            ],
            out_specs=out_spec,
            scratch_shapes=[pltpu.VMEM((tile_m, D_pad), jnp.float32)],
        ),
        compiler_params=pltpu.CompilerParams(
            dimension_semantics=("parallel", "arbitrary"),
            vmem_limit_bytes=vmem_limit),
        cost_estimate=pl.CostEstimate(flops=flops, transcendentals=0,
                                      bytes_accessed=bytes_accessed),
    )(xf, w1p, b1p, w2p, b2p)

    return out[:M, :d_model].reshape(B, S, d_model)


def init_params(key, d_model, hidden_dim, dtype=jnp.float32):
    # Deterministic init mirroring nn.Linear's U(-1/sqrt(fan_in), 1/sqrt(fan_in)).
    k1, k2, k3, k4 = jax.random.split(key, 4)
    bound1 = 1.0 / (d_model ** 0.5)
    bound2 = 1.0 / (hidden_dim ** 0.5)
    # Stored pre-transposed as (in, out) so the kernel computes x @ W + b.
    w1 = jax.random.uniform(k1, (d_model, hidden_dim), dtype, -bound1, bound1)
    b1 = jax.random.uniform(k2, (hidden_dim,), dtype, -bound1, bound1)
    w2 = jax.random.uniform(k3, (hidden_dim, d_model), dtype, -bound2, bound2)
    b2 = jax.random.uniform(k4, (d_model,), dtype, -bound2, bound2)
    return w1, b1, w2, b2


if __name__ == "__main__":
    key = jax.random.PRNGKey(0)
    kx, kp = jax.random.split(key)

    batch, seq, d_model, hidden_dim = 2, 8, 32, 128
    x = jax.random.normal(kx, (batch, seq, d_model), dtype=jnp.float32)
    w1, b1, w2, b2 = init_params(kp, d_model, hidden_dim)

    # --- exact check in f32 compute ----------------------------------------
    out_f32 = feed_forward(x, w1, b1, w2, b2, compute_dtype=jnp.float32)
    out_f32 = jax.block_until_ready(out_f32)
    ref_f32 = jnp.maximum(x @ w1 + b1, 0.0) @ w2 + b2
    assert out_f32.shape == (batch, seq, d_model)
    assert jnp.allclose(out_f32, ref_f32, atol=1e-5, rtol=1e-5)

    # --- default bf16 compute path (perf config) ----------------------------
    out_bf16 = feed_forward(x, w1, b1, w2, b2)  # compute_dtype=bf16
    out_bf16 = jax.block_until_ready(out_bf16)
    # Reference with matching bf16 casting of matmul inputs, f32 accumulation.
    xc = x.astype(jnp.bfloat16).astype(jnp.float32)
    w1c = w1.astype(jnp.bfloat16).astype(jnp.float32)
    w2c = w2.astype(jnp.bfloat16).astype(jnp.float32)
    h_ref = jnp.maximum(xc @ w1c + b1, 0.0)
    ref_bf16 = h_ref.astype(jnp.bfloat16).astype(jnp.float32) @ w2c + b2
    assert out_bf16.shape == (batch, seq, d_model)
    assert jnp.allclose(out_bf16, ref_bf16, atol=1e-2, rtol=1e-2)

    # --- exercise a multi-tile grid (forces several hidden/M steps) ---------
    batch2, seq2, d2, h2 = 4, 96, 160, 640
    x2 = jax.random.normal(jax.random.PRNGKey(1), (batch2, seq2, d2), jnp.float32)
    p2 = init_params(jax.random.PRNGKey(2), d2, h2)
    out2 = feed_forward(x2, *p2, tile_m=128, tile_h=256,
                        compute_dtype=jnp.float32)
    out2 = jax.block_until_ready(out2)
    ref2 = jnp.maximum(x2 @ p2[0] + p2[1], 0.0) @ p2[2] + p2[3]
    assert jnp.allclose(out2, ref2, atol=1e-4, rtol=1e-4)

    print("KERNEL_OK")
</pallas_src>

<mosaic_0001>
module attributes {stable_mosaic.version = 11 : i64} {
  func.func @ffn_kernel(%arg0: i32, %arg1: i32, %arg2: memref<16x128xf32, #tpu.memory_space<vmem>>, %arg3: memref<128x128xf32, #tpu.memory_space<vmem>>, %arg4: memref<1x128xf32, #tpu.memory_space<vmem>>, %arg5: memref<128x128xf32, #tpu.memory_space<vmem>>, %arg6: memref<1x128xf32, #tpu.memory_space<vmem>>, %arg7: memref<16x128xf32, #tpu.memory_space<vmem>>, %arg8: memref<16x128xf32, #tpu.memory_space<vmem>>) attributes {dimension_semantics = [#tpu.dimension_semantics<parallel>, #tpu.dimension_semantics<arbitrary>], iteration_bounds = array<i64: 1, 1>, scalar_prefetch = 0 : i64, scratch_operands = 1 : i64, tpu.core_type = #tpu.core_type<tc>, window_params = [{transform_indices = @transform_0, window_bounds = array<i64: 16, 128>}, {transform_indices = @transform_1, window_bounds = array<i64: 128, 128>}, {pipeline_mode = #tpu.pipeline_mode<synchronous>, transform_indices = @transform_2, window_bounds = array<i64: 1, 128>}, {transform_indices = @transform_3, window_bounds = array<i64: 128, 128>}, {pipeline_mode = #tpu.pipeline_mode<synchronous>, transform_indices = @transform_4, window_bounds = array<i64: 1, 128>}, {transform_indices = @transform_5, window_bounds = array<i64: 16, 128>}]} {
    %c0_i32 = arith.constant 0 : i32
    %0 = arith.cmpi eq, %arg1, %c0_i32 : i32
    %1 = arith.extui %0 : i1 to i32
    %c0_i32_0 = arith.constant 0 : i32
    %2 = arith.cmpi ne, %1, %c0_i32_0 : i32
    scf.if %2 {
      %cst_15 = arith.constant 0.000000e+00 : f32
      %22 = vector.broadcast %cst_15 : f32 to vector<16x128xf32>
      %c0_16 = arith.constant 0 : index
      %c0_17 = arith.constant 0 : index
      %23 = vector.load %arg8[%c0_16, %c0_17] : memref<16x128xf32, #tpu.memory_space<vmem>>, vector<16x128xf32>
      tpu.vector_store %arg8[%c0_16, %c0_17], %22 {strides = array<i32>} : memref<16x128xf32, #tpu.memory_space<vmem>>, vector<16x128xf32>,
    } else {
    }
    %c0 = arith.constant 0 : index
    %c0_1 = arith.constant 0 : index
    %3 = vector.load %arg2[%c0, %c0_1] : memref<16x128xf32, #tpu.memory_space<vmem>>, vector<16x128xf32>
    %c0_2 = arith.constant 0 : index
    %c0_3 = arith.constant 0 : index
    %4 = vector.load %arg3[%c0_2, %c0_3] : memref<128x128xf32, #tpu.memory_space<vmem>>, vector<128x128xf32>
    %cst = arith.constant dense<0.000000e+00> : vector<16x128xf32>
    %5 = tpu.matmul %3, %4, %cst {dimension_numbers = #tpu.dot_dimension_numbers<[1], [0], [0], [1], [0, 0, 1, 1], [], []>} : vector<16x128xf32>, vector<128x128xf32>, vector<16x128xf32> -> vector<16x128xf32>
    %c128_i32 = arith.constant 128 : i32
    %6 = arith.muli %arg1, %c128_i32 : i32
    %7 = tpu.assume_multiple %6, 128 : i32
    %c0_4 = arith.constant 0 : index
    %8 = arith.index_cast %7 : i32 to index
    %9 = vector.load %arg4[%c0_4, %8] : memref<1x128xf32, #tpu.memory_space<vmem>>, vector<1x128xf32>
    %10 = vector.broadcast %9 : vector<1x128xf32> to vector<16x128xf32>
    %11 = arith.addf %5, %10 : vector<16x128xf32>
    %cst_5 = arith.constant 0.000000e+00 : f32
    %12 = vector.broadcast %cst_5 : f32 to vector<16x128xf32>
    %13 = arith.maximumf %11, %12 : vector<16x128xf32>
    %c0_6 = arith.constant 0 : index
    %c0_7 = arith.constant 0 : index
    %14 = vector.load %arg8[%c0_6, %c0_7] : memref<16x128xf32, #tpu.memory_space<vmem>>, vector<16x128xf32>
    %c0_8 = arith.constant 0 : index
    %c0_9 = arith.constant 0 : index
    %15 = vector.load %arg5[%c0_8, %c0_9] : memref<128x128xf32, #tpu.memory_space<vmem>>, vector<128x128xf32>
    %cst_10 = arith.constant dense<0.000000e+00> : vector<16x128xf32>
    %16 = tpu.matmul %13, %15, %cst_10 {dimension_numbers = #tpu.dot_dimension_numbers<[1], [0], [0], [1], [0, 0, 1, 1], [], []>} : vector<16x128xf32>, vector<128x128xf32>, vector<16x128xf32> -> vector<16x128xf32>
    %17 = arith.addf %14, %16 : vector<16x128xf32>
    %c0_11 = arith.constant 0 : index
    %c0_12 = arith.constant 0 : index
    %18 = vector.load %arg8[%c0_11, %c0_12] : memref<16x128xf32, #tpu.memory_space<vmem>>, vector<16x128xf32>
    tpu.vector_store %arg8[%c0_11, %c0_12], %17 {strides = array<i32>} : memref<16x128xf32, #tpu.memory_space<vmem>>, vector<16x128xf32>,
    %c0_i32_13 = arith.constant 0 : i32
    %19 = arith.cmpi eq, %arg1, %c0_i32_13 : i32
    %20 = arith.extui %19 : i1 to i32
    %c0_i32_14 = arith.constant 0 : i32
    %21 = arith.cmpi ne, %20, %c0_i32_14 : i32
    scf.if %21 {
      %c0_15 = arith.constant 0 : index
      %c0_16 = arith.constant 0 : index
      %22 = vector.load %arg8[%c0_15, %c0_16] : memref<16x128xf32, #tpu.memory_space<vmem>>, vector<16x128xf32>
      %c0_17 = arith.constant 0 : index
      %c0_18 = arith.constant 0 : index
      %23 = vector.load %arg6[%c0_17, %c0_18] : memref<1x128xf32, #tpu.memory_space<vmem>>, vector<1x128xf32>
      %24 = vector.broadcast %23 : vector<1x128xf32> to vector<16x128xf32>
      %25 = arith.addf %22, %24 : vector<16x128xf32>
      %c0_19 = arith.constant 0 : index
      %c0_20 = arith.constant 0 : index
      %26 = vector.load %arg7[%c0_19, %c0_20] : memref<16x128xf32, #tpu.memory_space<vmem>>, vector<16x128xf32>
      tpu.vector_store %arg7[%c0_19, %c0_20], %25 {strides = array<i32>} : memref<16x128xf32, #tpu.memory_space<vmem>>, vector<16x128xf32>,
    } else {
    }
    return
  }
  func.func @transform_0(%arg0: i32, %arg1: i32) -> (i32, i32) {
    %c0_i32 = arith.constant 0 : i32
    %c0_i32_0 = arith.constant 0 : i32
    return %arg0, %c0_i32 : i32, i32
  }
  func.func @transform_1(%arg0: i32, %arg1: i32) -> (i32, i32) {
    %c0_i32 = arith.constant 0 : i32
    %c0_i32_0 = arith.constant 0 : i32
    return %c0_i32, %arg1 : i32, i32
  }
  func.func @transform_2(%arg0: i32, %arg1: i32) -> (i32, i32) {
    %c0_i32 = arith.constant 0 : i32
    %c0_i32_0 = arith.constant 0 : i32
    %c0_i32_1 = arith.constant 0 : i32
    return %c0_i32, %c0_i32_0 : i32, i32
  }
  func.func @transform_3(%arg0: i32, %arg1: i32) -> (i32, i32) {
    %c0_i32 = arith.constant 0 : i32
    %c0_i32_0 = arith.constant 0 : i32
    return %arg1, %c0_i32 : i32, i32
  }
  func.func @transform_4(%arg0: i32, %arg1: i32) -> (i32, i32) {
    %c0_i32 = arith.constant 0 : i32
    %c0_i32_0 = arith.constant 0 : i32
    %c0_i32_1 = arith.constant 0 : i32
    return %c0_i32, %c0_i32_0 : i32, i32
  }
  func.func @transform_5(%arg0: i32, %arg1: i32) -> (i32, i32) {
    %c0_i32 = arith.constant 0 : i32
    %c0_i32_0 = arith.constant 0 : i32
    return %arg0, %c0_i32 : i32, i32
  }
}

</mosaic_0001>

<bundles_post_ra>
// kernel: tpu_custom_call.1
= control target key start
LH: loop header
LB: loop body
LE: loop exit
PB: predicated region body
PF: predicated region fallthrough
CT: control target
= control target key end

     0   :  { %10 = vsyncpa [#allocation4], 0  ;;  %s687_s0 = inlined_call_operand.hbm [shape: f32[16,128], index: 0, kind: input, shape index: {}]   ;;  %s688_s1 = inlined_call_operand.hbm [shape: f32[128,128], index: 1, kind: input, shape index: {}]   ;;  %s689_s2 = inlined_call_operand.vmem [shape: f32[1,128], index: 2, kind: input, shape index: {}]   ;;  %s690_s3 = inlined_call_operand.hbm [shape: f32[128,128], index: 3, kind: input, shape index: {}]   ;;  %s691_s4 = inlined_call_operand.vmem [shape: f32[1,128], index: 4, kind: input, shape index: {}]   ;;  %s692_s5 = inlined_call_operand.hbm [shape: f32[16,128], index: 5, kind: output, shape index: {}]  }
   0x1   :  { %11 = vsyncpa [#allocation7], 0 }
   0x2   :  { %12 = vsyncpa [#allocation5], 0  ;;  %s578_s18 = smov [#allocation6]   ;;  %s579_s20 = smov [#allocation3]  }
   0x3   :  { %s30_s19 = sshll.u32 %s578_s18, 4  ;;  %s18_s21 = sshll.u32 %s579_s20, 4  ;;  %s31_s19 = int_to_ptr.vmem [resolvable:$true] %s30_s19  ;;  %s614_s21 = int_to_ptr.vmem [resolvable:$true] %s18_s21 }
   0x4   :  { %s484_s24 = scalar_lea.hbm %s688_s1, 2048 }
   0x5   :  { %p485_p0 = scmp.ne.s32.totalorder %s688_s1, %s484_s24  ;;  %p488_p1 = scmp.lt.u32.totalorder %s484_s24, %s688_s1 }
   0x7   :  { %p490_p2 = pnand %p488_p1, %p485_p0 }
   0x9   :  { %493 = shalt.err (!%p490_p2)
}
   0xa   :  { %s494_s29 = scalar_lea.vmem %s31_s19, 2048  ;;  %p499_p4 = scmp.lt.s32.totalorder %s31_s19, %s31_s19 }
   0xb   :  { %p495_p3 = scmp.ne.s32.totalorder %s31_s19, %s494_s29  ;;  %p500_p5 = scmp.lt.s32.totalorder %s494_s29, %s494_s29 }
   0xd   :  { %p501_p6 = por %p500_p5, %p499_p4 }
   0xf   :  { %p502_p7 = pnand %p501_p6, %p495_p3 }
  0x11   :  { %505 = shalt.err (!%p502_p7)
}
  0x12   :  { %s580_s30 = smov 128   ;;  %s581_s6 = smov 8  }
  0x13   :  { %36 = dma.hbm_to_vmem [thread:$0]  %s688_s1, 2048, %s31_s19, [#allocation7], %s580_s30, %s580_s30, %s581_s6  }
  0x14   :  { %s506_s11 = scalar_lea.hbm %s687_s0, 256 }
  0x15   :  { %p507_p8 = scmp.ne.s32.totalorder %s687_s0, %s506_s11  ;;  %p510_p9 = scmp.lt.u32.totalorder %s506_s11, %s687_s0 }
  0x17   :  { %p512_p10 = pnand %p510_p9, %p507_p8 }
  0x19   :  { %515 = shalt.err (!%p512_p10)
}
  0x1a   :  { %s516_s16 = scalar_lea.vmem %s614_s21, 256  ;;  %p521_p12 = scmp.lt.s32.totalorder %s614_s21, %s614_s21 }
  0x1b   :  { %p517_p11 = scmp.ne.s32.totalorder %s614_s21, %s516_s16  ;;  %p522_p13 = scmp.lt.s32.totalorder %s516_s16, %s516_s16 }
  0x1d   :  { %p523_p0 = por %p522_p13, %p521_p12 }
  0x1f   :  { %p524_p1 = pnand %p523_p0, %p517_p11 }
  0x21   :  { %527 = shalt.err (!%p524_p1)
}
  0x22   :  { %24 = dma.hbm_to_vmem [thread:$0]  %s687_s0, 256, %s614_s21, [#allocation4], %s580_s30, %s580_s30, %s581_s6  }
  0x23   :  { %s582_s18 = smov [#allocation8]   ;;  %s528_s23 = scalar_lea.hbm %s690_s3, 2048 }
  0x24   :  { %s44_s19 = sshll.u32 %s582_s18, 4  ;;  %p529_p2 = scmp.ne.s32.totalorder %s690_s3, %s528_s23  ;;  %s45_s19 = int_to_ptr.vmem [resolvable:$true] %s44_s19 }
  0x25   :  { %p532_p3 = scmp.lt.u32.totalorder %s528_s23, %s690_s3 }
  0x27   :  { %p534_p4 = pnand %p532_p3, %p529_p2 }
  0x29   :  { %537 = shalt.err (!%p534_p4)
}
  0x2a   :  { %s538_s28 = scalar_lea.vmem %s45_s19, 2048  ;;  %p543_p6 = scmp.lt.s32.totalorder %s45_s19, %s45_s19 }
  0x2b   :  { %p539_p5 = scmp.ne.s32.totalorder %s45_s19, %s538_s28  ;;  %p544_p7 = scmp.lt.s32.totalorder %s538_s28, %s538_s28 }
  0x2d   :  { %p545_p8 = por %p544_p7, %p543_p6 }
  0x2f   :  { %p546_p9 = pnand %p545_p8, %p539_p5 }
  0x31   :  { %549 = shalt.err (!%p546_p9)
}
  0x32   :  { %50 = dma.hbm_to_vmem [thread:$0]  %s690_s3, 2048, %s45_s19, [#allocation7], %s580_s30, %s580_s30, %s581_s6  }
  0x33   :  { %572 = dma.done.wait [#allocation4], 256  }
  0x34   :  { %573 = vsyncadd [#allocation4], 4294967040 }
  0x35   :  { %574 = dma.done.wait [#allocation7], 4096  }
  0x36   :  { %575 = vsyncadd [#allocation7], 4294963200  ;;  %v70_v0 = vld [vmem:[#allocation6] sm:$0xff]  ;;  %v71_v1 = vld [vmem:[#allocation6 + $0x8] sm:$0xff]  ;;  %s583_s9 = smov [#allocation9]  }
  0x37   :  { %v72_v2 = vld [vmem:[#allocation6 + $0x10] sm:$0xff]  ;;  %v414_v3 = vpack.c.bf16 %v71_v1, %v70_v0  ;;  %v73_v4 = vld [vmem:[#allocation6 + $0x18] sm:$0xff]  ;;  %v74_v6 = vld [vmem:[#allocation6 + $0x20] sm:$0xff]  ;;  %s292_s10 = sshll.u32 %s583_s9, 4  ;;  %s293_s10 = int_to_ptr.vmem [resolvable:$true] %s292_s10 }
  0x38   :  { %v418_v5 = vpack.c.bf16 %v73_v4, %v72_v2  ;;  %v75_v7 = vld [vmem:[#allocation6 + $0x28] sm:$0xff]  ;;  %v76_v9 = vld [vmem:[#allocation6 + $0x30] sm:$0xff]  ;;  %v77_v10 = vld [vmem:[#allocation6 + $0x38] sm:$0xff]  ;;  %p555_p11 = scmp.lt.s32.totalorder %s293_s10, %s293_s10 }
  0x39   :  { %415 = vmatprep.subr.bf16.mxu0 %v414_v3  ;;  %v422_v8 = vpack.c.bf16 %v75_v7, %v74_v6  ;;  %v68_v11 = vld [vmem:[#allocation3] sm:$0xff]  ;;  %v176_v12 = vld [vmem:[#allocation8] sm:$0xff]  ;;  %v177_v13 = vld [vmem:[#allocation8 + $0x8] sm:$0xff]  ;;  %v426_v20 = vpack.c.bf16 %v77_v10, %v76_v9 }
  0x3a   :  { %417 = vmatpush3.bf16.msra.mxu0 %v414_v3  ;;  %376 = vmatprep.mubr.f32.mxu0 %v68_v11  ;;  %v178_v14 = vld [vmem:[#allocation8 + $0x10] sm:$0xff]  ;;  %v446_v15 = vpack.c.bf16 %v177_v13, %v176_v12  ;;  %v179_v16 = vld [vmem:[#allocation8 + $0x18] sm:$0xff]  ;;  %v180_v18 = vld [vmem:[#allocation8 + $0x20] sm:$0xff] }
  0x3b   :  { %419 = vmatprep.subr.bf16.mxu0 %v418_v5  ;;  %v450_v17 = vpack.c.bf16 %v179_v16, %v178_v14  ;;  %v181_v19 = vld [vmem:[#allocation8 + $0x28] sm:$0xff]  ;;  %v78_v21 = vld [vmem:[#allocation6 + $0x40] sm:$0xff]  ;;  %v182_v24 = vld [vmem:[#allocation8 + $0x30] sm:$0xff] }
  0x3c   :  { %447 = vmatprep.subr.bf16.mxu1 %v446_v15  ;;  %v79_v22 = vld [vmem:[#allocation6 + $0x48] sm:$0xff]  ;;  %v454_v23 = vpack.c.bf16 %v181_v19, %v180_v18  ;;  %v183_v25 = vld [vmem:[#allocation8 + $0x38] sm:$0xff]  ;;  %v80_v27 = vld [vmem:[#allocation6 + $0x50] sm:$0xff] }
  0x3d   :  { %449 = vmatpush3.bf16.msra.mxu1 %v446_v15  ;;  %v430_v26 = vpack.c.bf16 %v79_v22, %v78_v21  ;;  %v81_v28 = vld [vmem:[#allocation6 + $0x58] sm:$0xff]  ;;  %v458_v29 = vpack.c.bf16 %v183_v25, %v182_v24  ;;  %v184_v30 = vld [vmem:[#allocation8 + $0x40] sm:$0xff]  ;;  %v185_v31 = vld [vmem:[#allocation8 + $0x48] sm:$0xff] }
  0x3e   :  { %421 = vmatpush3.bf16.msra.mxu0 %v418_v5  ;;  %451 = vmatprep.subr.bf16.mxu1 %v450_v17  ;;  %v434_v32 = vpack.c.bf16 %v81_v28, %v80_v27  ;;  %v82_v33 = vld [vmem:[#allocation6 + $0x60] sm:$0xff]  ;;  %v83_v34 = vld [vmem:[#allocation6 + $0x68] sm:$0xff]  ;;  %v462_v35 = vpack.c.bf16 %v185_v31, %v184_v30  ;;  %v186_v36 = vld [vmem:[#allocation8 + $0x50] sm:$0xff] }
  0x3f   :  { %423 = vmatprep.subr.bf16.mxu0 %v422_v8  ;;  %v187_v37 = vld [vmem:[#allocation8 + $0x58] sm:$0xff]  ;;  %v438_v38 = vpack.c.bf16 %v83_v34, %v82_v33  ;;  %v84_v39 = vld [vmem:[#allocation6 + $0x70] sm:$0xff]  ;;  %v188_v42 = vld [vmem:[#allocation8 + $0x60] sm:$0xff] }
  0x40   :  { %v85_v40 = vld [vmem:[#allocation6 + $0x78] sm:$0xff]  ;;  %v466_v41 = vpack.c.bf16 %v187_v37, %v186_v36  ;;  %v189_v43 = vld [vmem:[#allocation8 + $0x68] sm:$0xff]  ;;  %v190_v47 = vld [vmem:[#allocation8 + $0x70] sm:$0xff] }
  0x41   :  { %453 = vmatpush3.bf16.msra.mxu1 %v450_v17  ;;  %v442_v44 = vpack.c.bf16 %v85_v40, %v84_v39  ;;  %v470_v45 = vpack.c.bf16 %v189_v43, %v188_v42  ;;  %v69_v46 = vld [vmem:[#allocation3 + $0x8] sm:$0xff]  ;;  %v306_v50 = vld [vmem:[%s689_s2] ss:$0 sm:$0xff]  ;;  %s550_s2 = scalar_lea.vmem %s293_s10, 256 }
  0x42   :  { %425 = vmatpush3.bf16.msra.mxu0 %v422_v8  ;;  %455 = vmatprep.subr.bf16.mxu1 %v454_v23  ;;  %v191_v48 = vld [vmem:[#allocation8 + $0x78] sm:$0xff]  ;;  %v307_v57 = vld [vmem:[%s691_s4] ss:$0 sm:$0xff]  ;;  %p551_p10 = scmp.ne.s32.totalorder %s293_s10, %s550_s2  ;;  %p556_p12 = scmp.lt.s32.totalorder %s550_s2, %s550_s2 }
  0x43   :  { %427 = vmatprep.subr.bf16.mxu0 %v426_v20  ;;  %v474_v49 = vpack.c.bf16 %v191_v48, %v190_v47 }
  0x44   :  { %p557_p13 = por %p556_p12, %p555_p11 }
  0x45   :  { %457 = vmatpush3.bf16.msra.mxu1 %v454_v23 }
  0x46   :  { %429 = vmatpush3.bf16.msra.mxu0 %v426_v20  ;;  %459 = vmatprep.subr.bf16.mxu1 %v458_v29  ;;  %p558_p0 = pnand %p557_p13, %p551_p10 }
  0x47   :  { %431 = vmatprep.subr.bf16.mxu0 %v430_v26 }
  0x49   :  { %461 = vmatpush3.bf16.msra.mxu1 %v458_v29 }
  0x4a   :  { %433 = vmatpush3.bf16.msra.mxu0 %v430_v26  ;;  %463 = vmatprep.subr.bf16.mxu1 %v462_v35 }
  0x4b   :  { %435 = vmatprep.subr.bf16.mxu0 %v434_v32 }
  0x4d   :  { %465 = vmatpush3.bf16.msra.mxu1 %v462_v35 }
  0x4e   :  { %437 = vmatpush3.bf16.msra.mxu0 %v434_v32  ;;  %467 = vmatprep.subr.bf16.mxu1 %v466_v41 }
  0x4f   :  { %439 = vmatprep.subr.bf16.mxu0 %v438_v38 }
  0x51   :  { %469 = vmatpush3.bf16.msra.mxu1 %v466_v41 }
  0x52   :  { %441 = vmatpush3.bf16.msra.mxu0 %v438_v38  ;;  %471 = vmatprep.subr.bf16.mxu1 %v470_v45 }
  0x53   :  { %443 = vmatprep.subr.bf16.mxu0 %v442_v44 }
  0x55   :  { %473 = vmatpush3.bf16.msra.mxu1 %v470_v45 }
  0x56   :  { %445 = vmatpush3.bf16.msra.mxu0 %v442_v44  ;;  %475 = vmatprep.subr.bf16.mxu1 %v474_v49 }
  0x59   :  { %377 = vmatmul.mubr.f32.vlgmr.msra.gmra.mrb[0].mxu0 %v69_v46  ;;  %477 = vmatpush3.bf16.msra.mxu1 %v474_v49 }
 0x12c   :  { %v378_v51 = vpop.f32.mrb[0].mxu0 }
 0x12d   :  { %v169_v52 = vadd.f32 %v378_v51, %v306_v50  ;;  %v163_v53 = vpop.f32.mrb[1].mxu0 }
 0x12e   :  { %v164_v54 = vadd.f32 %v306_v50, %v163_v53 }
 0x12f   :  { %v173_v56 = vmax.f32 %v169_v52, 0.0 }
 0x130   :  { %v172_v55 = vmax.f32 %v164_v54, 0.0 }
 0x132   :  { %411 = vmatprep.mubr.f32.mxu1 %v172_v55 }
 0x133   :  { %412 = vmatmul.mubr.f32.vlgmr.msra.gmra.mrb[0].mxu1 %v173_v56 }
 0x206   :  { %v413_v58 = vpop.f32.mrb[0].mxu1 }
 0x207   :  { %v284_v59 = vadd.f32 %v413_v58, %v307_v57  ;;  %v258_v60 = vpop.f32.mrb[1].mxu1 }
 0x208   :  { %v283_v61 = vadd.f32 %v307_v57, %v258_v60 }
 0x209   :  { %286 = vst [vmem:[#allocation9 + $0x8] sm:$0xff] %v284_v59 }
 0x20a   :  { %285 = vst [vmem:[#allocation9] sm:$0xff] %v283_v61 }
 0x20b   :  { %561 = shalt.err (!%p558_p0)
}
 0x20c   :  { %s562_s4 = scalar_lea.hbm %s692_s5, 256 }
 0x20d   :  { %p563_p1 = scmp.ne.s32.totalorder %s692_s5, %s562_s4  ;;  %p566_p2 = scmp.lt.u32.totalorder %s562_s4, %s692_s5 }
 0x20f   :  { %p568_p3 = pnand %p566_p2, %p563_p1 }
 0x211   :  { %571 = shalt.err (!%p568_p3)
}
 0x212   :  { %298 = dma.vmem_to_hbm [thread:$0]  %s293_s10, 256, %s692_s5, [#allocation5], %s580_s30, %s580_s30, %s581_s6  }
 0x213   :  { %576 = dma.done.wait [#allocation5], 256  }
 0x214   :  { %577 = vsyncadd [#allocation5], 4294967040 }
 0x215   :  { %302 = vsyncpa [#allocation4], 1 }
 0x216   :  { %303 = vsyncpa [#allocation7], 1 }
 0x217   :  { %304 = vsyncpa [#allocation5], 1 }

</bundles_post_ra>
